<compile_context>
chip_gen: v7x
topology: tpu7x:2x2x1
jax: 0.10.0
libtpu: 0.0.40
codegen_flags: <defaults>
</compile_context>

<pallas_src>
import functools

import jax
import jax.numpy as jnp
from jax.experimental import pallas as pl
from jax.experimental.pallas import tpu as pltpu


def _rowwise_sum_sq(d):
    """Row-wise sum of squares of `d` ((rows, feat) f32) -> (rows, 1) f32.

    Implemented as MXU matmuls against a ones column so the cross-lane
    reduction stays off the XLU.  The f32 squares are split into bf16 hi/lo
    parts (compensated bf16x2) so accuracy stays at ~f32 level while using
    the canonical bf16 MXU path; the MXU is otherwise idle in this kernel.
    """
    sq = d * d
    hi = sq.astype(jnp.bfloat16)
    lo = (sq - hi.astype(jnp.float32)).astype(jnp.bfloat16)
    ones = jnp.ones((d.shape[1], 1), jnp.bfloat16)
    return (jnp.dot(hi, ones, preferred_element_type=jnp.float32)
            + jnp.dot(lo, ones, preferred_element_type=jnp.float32))


def _triplet_loss_kernel(margin_ref, e1_ref, e2_ref, e3_ref, out_ref, *,
                         batch, block_rows, blocks_per_split, need_mask):
    """One (block_rows, D) batch tile; accumulates a per-split partial sum."""
    c = pl.program_id(0)   # split index ("parallel" -> one per TensorCore on v7x)
    i = pl.program_id(1)   # batch-tile index within the split ("arbitrary")

    @pl.when(i == 0)
    def _init():
        out_ref[...] = jnp.zeros_like(out_ref)

    # Inputs stream in their native dtype; upcast in VMEM (no HBM f32 copies).
    e1 = e1_ref[...].astype(jnp.float32)
    e2 = e2_ref[...].astype(jnp.float32)
    e3 = e3_ref[...].astype(jnp.float32)

    d_pos = e1 - e2
    d_neg = e1 - e3

    # torch.norm(x, p=2, dim=1): sqrt of sum of squares over the feature dim.
    pos_distance = jnp.sqrt(_rowwise_sum_sq(d_pos))   # (block_rows, 1)
    neg_distance = jnp.sqrt(_rowwise_sum_sq(d_neg))   # (block_rows, 1)

    margin = margin_ref[0]
    # torch.clamp(..., min=0)
    loss = jnp.maximum(pos_distance - neg_distance + margin, jnp.float32(0.0))

    if need_mask:
        # Zero padding rows (partial last block / clamped duplicate block).
        # Applied to the final (block_rows, 1) column -> a handful of VPU ops.
        start = (c * blocks_per_split + i) * block_rows
        row = jax.lax.broadcasted_iota(jnp.int32, loss.shape, 0) + start
        loss = jnp.where(row < batch, loss, jnp.float32(0.0))

    # Accumulate into the lane-dense (1, 128) VMEM output block (resident
    # across the "arbitrary" axis; written back to HBM once per split).
    out_ref[...] += jnp.sum(loss)


def _pick_block_rows(batch, feat, dtype):
    itemsize = jnp.dtype(dtype).itemsize
    # Sublane packing: f32 -> 8 rows per vreg, bf16 -> 16, int8/fp8 -> 32.
    row_mult = max(8, 32 // itemsize)
    if batch <= row_mult:
        return batch                           # single full-extent block
    # VMEM bytes per row, including lane padding of the feature dim to 128.
    padded_feat = ((feat + 127) // 128) * 128
    bytes_per_row = padded_feat * itemsize
    # ~4 MiB of VMEM per input tile: 3 inputs x 2 buffers ~ 24 MiB.
    rows = (4 * 1024 * 1024) // max(bytes_per_row, 1)
    # Keep at least two tiles so the "parallel" axis can feed both v7x cores.
    rows = min(rows, -(-batch // 2))
    rows = max(row_mult, (rows // row_mult) * row_mult)
    return min(rows, batch)


def triplet_loss(emb1, emb2, emb3, margin=20.0, *, block_rows=None):
    assert emb1.shape == emb2.shape == emb3.shape
    assert emb1.ndim == 2
    batch, feat = emb1.shape
    itemsize = jnp.dtype(emb1.dtype).itemsize
    row_mult = max(8, 32 // itemsize)

    margin_arr = jnp.reshape(jnp.asarray(margin, jnp.float32), (1,))

    if block_rows is None:
        block_rows = _pick_block_rows(batch, feat, emb1.dtype)
    assert block_rows == batch or block_rows % row_mult == 0, block_rows

    n_blocks = pl.cdiv(batch, block_rows)
    num_splits = 2 if n_blocks >= 2 else 1      # feed both v7x TensorCores
    blocks_per_split = pl.cdiv(n_blocks, num_splits)
    grid = (num_splits, blocks_per_split)
    need_mask = (num_splits * blocks_per_split * block_rows) != batch
    last_block = n_blocks - 1

    def emb_index_map(c, i):
        # Clamp so the (at most one) overhanging step of the second split reads
        # an in-bounds block; its rows are zeroed by the logical-row mask.
        return (jnp.minimum(c * blocks_per_split + i, last_block), 0)

    emb_spec = pl.BlockSpec((block_rows, feat), emb_index_map)

    kernel = functools.partial(
        _triplet_loss_kernel,
        batch=batch,
        block_rows=block_rows,
        blocks_per_split=blocks_per_split,
        need_mask=need_mask,
    )

    padded_feat = ((feat + 127) // 128) * 128
    tile_bytes = block_rows * padded_feat * itemsize
    vmem_limit = max(32 * 1024 * 1024, 3 * 2 * tile_bytes + (2 << 20))

    partials = pl.pallas_call(
        kernel,
        out_shape=jax.ShapeDtypeStruct((1, num_splits * 128), jnp.float32),
        grid=grid,
        in_specs=[
            pl.BlockSpec(memory_space=pltpu.MemorySpace.SMEM),  # margin scalar
            emb_spec,
            emb_spec,
            emb_spec,
        ],
        out_specs=pl.BlockSpec((1, 128), lambda c, i: (0, c)),
        compiler_params=pltpu.CompilerParams(
            dimension_semantics=("parallel", "arbitrary"),
            vmem_limit_bytes=vmem_limit,
        ),
    )(margin_arr, emb1, emb2, emb3)

    # Each split broadcast its partial sum across its 128-lane chunk; take one
    # lane per split, combine, and apply .mean() with the true batch size.
    per_split = partials[0].reshape(num_splits, 128)[:, 0]
    return jnp.sum(per_split) / batch


def _reference(emb1, emb2, emb3, margin=20.0):
    pos = jnp.linalg.norm(emb1 - emb2, axis=1)
    neg = jnp.linalg.norm(emb1 - emb3, axis=1)
    return jnp.mean(jnp.maximum(pos - neg + margin, 0.0))


if __name__ == "__main__":
    # 1) GIN-like embeddings: (batch, hidden) = (8, 32), f32, single block.
    k1, k2, k3 = jax.random.split(jax.random.PRNGKey(0), 3)
    B, D = 8, 32
    emb1 = jax.random.normal(k1, (B, D), dtype=jnp.float32)
    emb2 = jax.random.normal(k2, (B, D), dtype=jnp.float32)
    emb3 = jax.random.normal(k3, (B, D), dtype=jnp.float32)
    loss = jax.block_until_ready(triplet_loss(emb1, emb2, emb3, margin=20.0))
    ref = _reference(emb1, emb2, emb3, margin=20.0)
    assert jnp.allclose(loss, ref, rtol=1e-4, atol=1e-4), (loss, ref)

    # 2) Multi-block + two splits + partial last block (B % block_rows != 0).
    k4, k5, k6 = jax.random.split(jax.random.PRNGKey(1), 3)
    B2, D2 = 200, 128
    a = jax.random.normal(k4, (B2, D2), dtype=jnp.float32)
    p = jax.random.normal(k5, (B2, D2), dtype=jnp.float32)
    n = jax.random.normal(k6, (B2, D2), dtype=jnp.float32)
    loss2 = jax.block_until_ready(triplet_loss(a, p, n, margin=5.0, block_rows=64))
    ref2 = _reference(a, p, n, margin=5.0)
    assert jnp.allclose(loss2, ref2, rtol=1e-4, atol=1e-4), (loss2, ref2)

    # 3) Native bf16 streaming + odd block count (exercises the clamped
    #    duplicate block on the second split and the 16-row sublane packing).
    k7, k8, k9 = jax.random.split(jax.random.PRNGKey(2), 3)
    B3, D3 = 48, 64
    b1 = jax.random.normal(k7, (B3, D3), dtype=jnp.float32).astype(jnp.bfloat16)
    b2 = jax.random.normal(k8, (B3, D3), dtype=jnp.float32).astype(jnp.bfloat16)
    b3 = jax.random.normal(k9, (B3, D3), dtype=jnp.float32).astype(jnp.bfloat16)
    loss3 = jax.block_until_ready(triplet_loss(b1, b2, b3, margin=10.0))
    ref3 = _reference(b1.astype(jnp.float32), b2.astype(jnp.float32),
                      b3.astype(jnp.float32), margin=10.0)
    assert jnp.allclose(loss3, ref3, rtol=1e-3, atol=1e-3), (loss3, ref3)

    print("KERNEL_OK")
</pallas_src>

<mosaic_0001>
module attributes {stable_mosaic.version = 11 : i64} {
  func.func @_triplet_loss_kernel(%arg0: i32, %arg1: i32, %arg2: memref<1xf32, #tpu.memory_space<smem>>, %arg3: memref<8x32xf32, #tpu.memory_space<vmem>>, %arg4: memref<8x32xf32, #tpu.memory_space<vmem>>, %arg5: memref<8x32xf32, #tpu.memory_space<vmem>>, %arg6: memref<1x128xf32, #tpu.memory_space<vmem>>) attributes {dimension_semantics = [#tpu.dimension_semantics<parallel>, #tpu.dimension_semantics<arbitrary>], iteration_bounds = array<i64: 1, 1>, scalar_prefetch = 0 : i64, scratch_operands = 0 : i64, tpu.core_type = #tpu.core_type<tc>, window_params = [{transform_indices = @transform_0, window_bounds = array<i64: 1>}, {transform_indices = @transform_1, window_bounds = array<i64: 8, 32>}, {transform_indices = @transform_2, window_bounds = array<i64: 8, 32>}, {transform_indices = @transform_3, window_bounds = array<i64: 8, 32>}, {transform_indices = @transform_4, window_bounds = array<i64: 1, 128>}]} {
    %c0_i32 = arith.constant 0 : i32
    %0 = arith.cmpi eq, %arg1, %c0_i32 : i32
    %1 = arith.extui %0 : i1 to i32
    %c0_i32_0 = arith.constant 0 : i32
    %2 = arith.cmpi ne, %1, %c0_i32_0 : i32
    scf.if %2 {
      %cst_18 = arith.constant 0.000000e+00 : f32
      %42 = vector.broadcast %cst_18 : f32 to vector<1x128xf32>
      %c0_19 = arith.constant 0 : index
      %c0_20 = arith.constant 0 : index
      %43 = vector.load %arg6[%c0_19, %c0_20] : memref<1x128xf32, #tpu.memory_space<vmem>>, vector<1x128xf32>
      tpu.vector_store %arg6[%c0_19, %c0_20], %42 {strides = array<i32>} : memref<1x128xf32, #tpu.memory_space<vmem>>, vector<1x128xf32>,
    } else {
    }
    %c0 = arith.constant 0 : index
    %c0_1 = arith.constant 0 : index
    %3 = vector.load %arg3[%c0, %c0_1] : memref<8x32xf32, #tpu.memory_space<vmem>>, vector<8x32xf32>
    %c0_2 = arith.constant 0 : index
    %c0_3 = arith.constant 0 : index
    %4 = vector.load %arg4[%c0_2, %c0_3] : memref<8x32xf32, #tpu.memory_space<vmem>>, vector<8x32xf32>
    %c0_4 = arith.constant 0 : index
    %c0_5 = arith.constant 0 : index
    %5 = vector.load %arg5[%c0_4, %c0_5] : memref<8x32xf32, #tpu.memory_space<vmem>>, vector<8x32xf32>
    %6 = arith.subf %3, %4 : vector<8x32xf32>
    %7 = arith.subf %3, %5 : vector<8x32xf32>
    %8 = arith.mulf %6, %6 : vector<8x32xf32>
    %9 = arith.truncf %8 : vector<8x32xf32> to vector<8x32xbf16>
    %10 = arith.extf %9 : vector<8x32xbf16> to vector<8x32xf32>
    %11 = arith.subf %8, %10 : vector<8x32xf32>
    %12 = arith.truncf %11 : vector<8x32xf32> to vector<8x32xbf16>
    %cst = arith.constant 1.000000e+00 : bf16
    %13 = vector.broadcast %cst : bf16 to vector<32x1xbf16>
    %cst_6 = arith.constant dense<0.000000e+00> : vector<8x1xf32>
    %14 = tpu.matmul %9, %13, %cst_6 {dimension_numbers = #tpu.dot_dimension_numbers<[1], [0], [0], [1], [0, 0, 1, 1], [], []>} : vector<8x32xbf16>, vector<32x1xbf16>, vector<8x1xf32> -> vector<8x1xf32>
    %cst_7 = arith.constant dense<0.000000e+00> : vector<8x1xf32>
    %15 = tpu.matmul %12, %13, %cst_7 {dimension_numbers = #tpu.dot_dimension_numbers<[1], [0], [0], [1], [0, 0, 1, 1], [], []>} : vector<8x32xbf16>, vector<32x1xbf16>, vector<8x1xf32> -> vector<8x1xf32>
    %16 = arith.addf %14, %15 : vector<8x1xf32>
    %17 = math.sqrt %16 : vector<8x1xf32>
    %18 = arith.mulf %7, %7 : vector<8x32xf32>
    %19 = arith.truncf %18 : vector<8x32xf32> to vector<8x32xbf16>
    %20 = arith.extf %19 : vector<8x32xbf16> to vector<8x32xf32>
    %21 = arith.subf %18, %20 : vector<8x32xf32>
    %22 = arith.truncf %21 : vector<8x32xf32> to vector<8x32xbf16>
    %cst_8 = arith.constant 1.000000e+00 : bf16
    %23 = vector.broadcast %cst_8 : bf16 to vector<32x1xbf16>
    %cst_9 = arith.constant dense<0.000000e+00> : vector<8x1xf32>
    %24 = tpu.matmul %19, %23, %cst_9 {dimension_numbers = #tpu.dot_dimension_numbers<[1], [0], [0], [1], [0, 0, 1, 1], [], []>} : vector<8x32xbf16>, vector<32x1xbf16>, vector<8x1xf32> -> vector<8x1xf32>
    %cst_10 = arith.constant dense<0.000000e+00> : vector<8x1xf32>
    %25 = tpu.matmul %22, %23, %cst_10 {dimension_numbers = #tpu.dot_dimension_numbers<[1], [0], [0], [1], [0, 0, 1, 1], [], []>} : vector<8x32xbf16>, vector<32x1xbf16>, vector<8x1xf32> -> vector<8x1xf32>
    %26 = arith.addf %24, %25 : vector<8x1xf32>
    %27 = math.sqrt %26 : vector<8x1xf32>
    %c0_11 = arith.constant 0 : index
    %28 = memref.load %arg2[%c0_11] : memref<1xf32, #tpu.memory_space<smem>>
    %29 = arith.subf %17, %27 : vector<8x1xf32>
    %30 = vector.broadcast %28 : f32 to vector<8x1xf32>
    %31 = arith.addf %29, %30 : vector<8x1xf32>
    %cst_12 = arith.constant 0.000000e+00 : f32
    %32 = vector.broadcast %cst_12 : f32 to vector<8x1xf32>
    %33 = arith.maximumf %31, %32 : vector<8x1xf32>
    %c0_13 = arith.constant 0 : index
    %c0_14 = arith.constant 0 : index
    %34 = vector.load %arg6[%c0_13, %c0_14] : memref<1x128xf32, #tpu.memory_space<vmem>>, vector<1x128xf32>
    %35 = vector.shape_cast %33 : vector<8x1xf32> to vector<1x8x1xf32>
    %cst_15 = arith.constant dense<0.000000e+00> : vector<1xf32>
    %36 = vector.multi_reduction <add>, %35, %cst_15 [1, 2] : vector<1x8x1xf32> to vector<1xf32>
    %37 = vector.shape_cast %36 : vector<1xf32> to vector<1x1x1xf32>
    %38 = vector.extract %37[0, 0, 0] : f32 from vector<1x1x1xf32>
    %39 = vector.broadcast %38 : f32 to vector<1x128xf32>
    %40 = arith.addf %34, %39 : vector<1x128xf32>
    %c0_16 = arith.constant 0 : index
    %c0_17 = arith.constant 0 : index
    %41 = vector.load %arg6[%c0_16, %c0_17] : memref<1x128xf32, #tpu.memory_space<vmem>>, vector<1x128xf32>
    tpu.vector_store %arg6[%c0_16, %c0_17], %40 {strides = array<i32>} : memref<1x128xf32, #tpu.memory_space<vmem>>, vector<1x128xf32>,
    return
  }
  func.func @transform_0(%arg0: i32, %arg1: i32) -> i32 {
    %c0_i32 = arith.constant 0 : i32
    %c0_i32_0 = arith.constant 0 : i32
    return %c0_i32 : i32
  }
  func.func @transform_1(%arg0: i32, %arg1: i32) -> (i32, i32) {
    %c1_i32 = arith.constant 1 : i32
    %0 = arith.muli %arg0, %c1_i32 : i32
    %1 = arith.addi %0, %arg1 : i32
    %c0_i32 = arith.constant 0 : i32
    %2 = arith.minsi %1, %c0_i32 : i32
    %c0_i32_0 = arith.constant 0 : i32
    %c0_i32_1 = arith.constant 0 : i32
    return %2, %c0_i32_0 : i32, i32
  }
  func.func @transform_2(%arg0: i32, %arg1: i32) -> (i32, i32) {
    %c1_i32 = arith.constant 1 : i32
    %0 = arith.muli %arg0, %c1_i32 : i32
    %1 = arith.addi %0, %arg1 : i32
    %c0_i32 = arith.constant 0 : i32
    %2 = arith.minsi %1, %c0_i32 : i32
    %c0_i32_0 = arith.constant 0 : i32
    %c0_i32_1 = arith.constant 0 : i32
    return %2, %c0_i32_0 : i32, i32
  }
  func.func @transform_3(%arg0: i32, %arg1: i32) -> (i32, i32) {
    %c1_i32 = arith.constant 1 : i32
    %0 = arith.muli %arg0, %c1_i32 : i32
    %1 = arith.addi %0, %arg1 : i32
    %c0_i32 = arith.constant 0 : i32
    %2 = arith.minsi %1, %c0_i32 : i32
    %c0_i32_0 = arith.constant 0 : i32
    %c0_i32_1 = arith.constant 0 : i32
    return %2, %c0_i32_0 : i32, i32
  }
  func.func @transform_4(%arg0: i32, %arg1: i32) -> (i32, i32) {
    %c0_i32 = arith.constant 0 : i32
    %c0_i32_0 = arith.constant 0 : i32
    return %c0_i32, %arg0 : i32, i32
  }
}

</mosaic_0001>

<bundles_post_ra>
// kernel: tpu_custom_call.1
= control target key start
LH: loop header
LB: loop body
LE: loop exit
PB: predicated region body
PF: predicated region fallthrough
CT: control target
= control target key end

     0   :  { %10 = vsyncpa [#allocation4], 0  ;;  %s558_s0 = inlined_call_operand.<no memory space> [shape: f32[1], index: 0, kind: input, shape index: {}]   ;;  %s559_s1 = inlined_call_operand.hbm [shape: f32[8,32], index: 1, kind: input, shape index: {}]   ;;  %s560_s2 = inlined_call_operand.hbm [shape: f32[8,32], index: 2, kind: input, shape index: {}]   ;;  %s561_s3 = inlined_call_operand.vmem [shape: f32[8,32], index: 3, kind: input, shape index: {}]   ;;  %s562_s4 = inlined_call_operand.hbm [shape: f32[1,128], index: 4, kind: output, shape index: {}]  }
   0x1   :  { %11 = vsyncpa [#allocation7], 0 }
   0x2   :  { %12 = vsyncpa [#allocation5], 0  ;;  %s481_s15 = smov [#allocation3]   ;;  %s482_s17 = smov [#allocation6]  }
   0x3   :  { %s26_s16 = sshll.u32 %s481_s15, 4  ;;  %s41_s18 = sshll.u32 %s482_s17, 4  ;;  %s27_s16 = int_to_ptr.vmem [resolvable:$true] %s26_s16  ;;  %s42_s18 = int_to_ptr.vmem [resolvable:$true] %s41_s18 }
   0x4   :  { %s409_s21 = scalar_lea.hbm %s559_s1, 128 }
   0x5   :  { %p410_p0 = scmp.ne.s32.totalorder %s559_s1, %s409_s21  ;;  %p413_p1 = scmp.lt.u32.totalorder %s409_s21, %s559_s1 }
   0x7   :  { %p415_p2 = pnand %p413_p1, %p410_p0 }
   0x9   :  { %418 = shalt.err (!%p415_p2)
}
   0xa   :  { %s419_s26 = scalar_lea.vmem %s27_s16, 128  ;;  %p424_p4 = scmp.lt.s32.totalorder %s27_s16, %s27_s16 }
   0xb   :  { %p420_p3 = scmp.ne.s32.totalorder %s27_s16, %s419_s26  ;;  %p425_p5 = scmp.lt.s32.totalorder %s419_s26, %s419_s26 }
   0xd   :  { %p426_p6 = por %p425_p5, %p424_p4 }
   0xf   :  { %p427_p7 = pnand %p426_p6, %p420_p3 }
  0x11   :  { %430 = shalt.err (!%p427_p7)
}
  0x12   :  { %29 = dma.hbm_to_vmem [thread:$0]  %s559_s1, 128, %s27_s16, [#allocation4]  }
  0x13   :  { %s431_s5 = scalar_lea.hbm %s560_s2, 128 }
  0x14   :  { %p432_p8 = scmp.ne.s32.totalorder %s560_s2, %s431_s5  ;;  %p435_p9 = scmp.lt.u32.totalorder %s431_s5, %s560_s2 }
  0x16   :  { %p437_p10 = pnand %p435_p9, %p432_p8 }
  0x18   :  { %440 = shalt.err (!%p437_p10)
}
  0x19   :  { %s441_s10 = scalar_lea.vmem %s42_s18, 128  ;;  %p446_p12 = scmp.lt.s32.totalorder %s42_s18, %s42_s18 }
  0x1a   :  { %p442_p11 = scmp.ne.s32.totalorder %s42_s18, %s441_s10  ;;  %p447_p13 = scmp.lt.s32.totalorder %s441_s10, %s441_s10 }
  0x1c   :  { %p448_p0 = por %p447_p13, %p446_p12 }
  0x1e   :  { %p449_p1 = pnand %p448_p0, %p442_p11 }
  0x20   :  { %452 = shalt.err (!%p449_p1)
}
  0x21   :  { %44 = dma.hbm_to_vmem [thread:$0]  %s560_s2, 128, %s42_s18, [#allocation7]  }
  0x22   :  { %475 = dma.done.wait [#allocation4], 128  }
  0x23   :  { %476 = vsyncadd [#allocation4], 4294967168 }
  0x24   :  { %477 = dma.done.wait [#allocation7], 128  }
  0x25   :  { %478 = vsyncadd [#allocation7], 4294967168  ;;  %v483_v0 = vmov 0.0   ;;  %v484_v1 = vmov 1065369472   ;;  %vm485_vm0 = vmmov 0   ;;  %v297_v35 = vstv %s558_s0 }
  0x26   :  { %92 = vst [vmem:[#allocation8] sm:$0x1] %v483_v0  ;;  %357 = vmatprep.subr.bf16.mxu0 %v483_v0  ;;  %373 = vmatprep.subr.bf16.mxu1 %v483_v0  ;;  %v93_v2 = vld [vmem:[#allocation3] sm:$0xff]  ;;  %v94_v3 = vld [vmem:[#allocation6] sm:$0xff]  ;;  %vm103_vm1 = vcmask 261120   ;;  %vm301_vm6 = vcmask 7168  }
  0x27   :  { %358 = vmatpush3.bf16.msra.mxu0 %v484_v1  ;;  %374 = vmatpush3.bf16.msra.mxu1 %v484_v1  ;;  %v95_v4 = vld [vmem:[%s561_s3] sm:$0xff]  ;;  %v96_v5 = vsub.f32 %v93_v2, %v94_v3  ;;  %s486_s14 = smov [#allocation8]  }
  0x28   :  { %359 = vmatprep.subr.bf16.mxu0 %v483_v0  ;;  %375 = vmatprep.subr.bf16.mxu1 %v483_v0  ;;  %v97_v6 = vsub.f32 %v93_v2, %v95_v4  ;;  %s321_s15 = sshll.u32 %s486_s14, 4  ;;  %s322_s15 = int_to_ptr.vmem [resolvable:$true] %s321_s15 }
  0x29   :  { %361 = vmatprep.mubr.msk.bf16.mxu0 %vm485_vm0, %v483_v0  ;;  %377 = vmatprep.mubr.msk.bf16.mxu1 %vm485_vm0, %v483_v0  ;;  %v98_v7 = vmul.f32 %v96_v5, %v96_v5  ;;  %s453_s0 = scalar_lea.vmem %s322_s15, 16  ;;  %s457_s17 = scalar_lea.vmem %s322_s15, 32 }
  0x2a   :  { %v197_v8 = vmul.f32 %v97_v6, %v97_v6  ;;  %p454_p2 = scmp.ne.s32.totalorder %s322_s15, %s453_s0  ;;  %p458_p3 = scmp.lt.s32.totalorder %s322_s15, %s322_s15 }
  0x2b   :  { %360 = vmatpush3.bf16.msra.mxu0 %v484_v1  ;;  %376 = vmatpush3.bf16.msra.mxu1 %v484_v1  ;;  %v99_v9 = vpack.c.bf16 %v98_v7, %v98_v7  ;;  %p459_p4 = scmp.lt.s32.totalorder %s457_s17, %s453_s0 }
  0x2c   :  { %365 = vmatprep.subr.bf16.mxu0 %v483_v0  ;;  %381 = vmatprep.subr.bf16.mxu1 %v483_v0  ;;  %v198_v10 = vpack.c.bf16 %v197_v8, %v197_v8 }
  0x2d   :  { %v100_v11 = vunpack.c.l.bf16 %v99_v9  ;;  %v300_v47 = vld [vmem:[#allocation8] sm:$0x1]  ;;  %p460_p5 = por %p459_p4, %p458_p3 }
  0x2e   :  { %v199_v12 = vunpack.c.l.bf16 %v198_v10 }
  0x2f   :  { %v101_v13 = vsub.f32 %v98_v7, %v100_v11  ;;  %p461_p6 = pnand %p460_p5, %p454_p2 }
  0x30   :  { %v200_v14 = vsub.f32 %v197_v8, %v199_v12 }
  0x31   :  { %v102_v15 = vpack.c.bf16 %v101_v13, %v101_v13 }
  0x32   :  { %v201_v16 = vpack.c.bf16 %v200_v14, %v200_v14 }
  0x33   :  { %362 = vmatmul.mubr.msk.bf16.vlgmr.msra.gmra.mrb[0].mxu0 %vm103_vm1, %v102_v15 }
  0x34   :  { %378 = vmatmul.mubr.msk.bf16.vlgmr.msra.gmra.mrb[0].mxu1 %vm103_vm1, %v201_v16  ;;  %366 = vmatpush3.bf16.msra.mxu0 %v484_v1 }
  0x35   :  { %382 = vmatpush3.bf16.msra.mxu1 %v484_v1  ;;  %367 = vmatprep.subr.bf16.mxu0 %v483_v0 }
  0x36   :  { %383 = vmatprep.subr.bf16.mxu1 %v483_v0  ;;  %369 = vmatprep.mubr.msk.bf16.mxu0 %vm485_vm0, %v483_v0 }
  0x37   :  { %385 = vmatprep.mubr.msk.bf16.mxu1 %vm485_vm0, %v483_v0 }
  0x38   :  { %368 = vmatpush3.bf16.msra.mxu0 %v484_v1 }
  0x39   :  { %384 = vmatpush3.bf16.msra.mxu1 %v484_v1 }
  0x3f   :  { %370 = vmatmul.mubr.msk.bf16.vlgmr.msra.gmra.mrb[0].mxu0 %vm103_vm1, %v99_v9 }
  0x40   :  { %386 = vmatmul.mubr.msk.bf16.vlgmr.msra.gmra.mrb[0].mxu1 %vm103_vm1, %v198_v10 }
 0x112   :  { %v184_v17 = vpop.f32.mrb[0].mxu0 }
 0x113   :  { %v282_v18 = vpop.f32.mrb[0].mxu1  ;;  %405 = vrsqrt.f32 %v184_v17  ;;  %v371_v19 = vpop.f32.mrb[1].mxu0  ;;  %vm192_vm2 = vcmp.eq.f32.partialorder %v184_v17, inf  ;;  %v195_v29 = vand.u32 2147483648, %v184_v17  ;;  %vm194_vm3 = vcmp.eq.f32.partialorder %v184_v17, 0.0 }
 0x114   :  { %v387_v20 = vpop.f32.mrb[1].mxu1  ;;  %407 = vrsqrt.f32 %v282_v18  ;;  %v187_v21 = vpop.f32.mrb[2].mxu0  ;;  %vm290_vm4 = vcmp.eq.f32.partialorder %v282_v18, inf  ;;  %v293_v31 = vand.u32 2147483648, %v282_v18  ;;  %vm292_vm5 = vcmp.eq.f32.partialorder %v282_v18, 0.0 }
 0x115   :  { %v285_v22 = vpop.f32.mrb[2].mxu1  ;;  %v372_v23 = vpop.f32.mrb[3].mxu0 }
 0x116   :  { %v388_v24 = vpop.f32.mrb[3].mxu1 }
 0x11d   :  { %v406_v25 = vpop.eup %405 }
 0x11e   :  { %v408_v26 = vpop.eup %407  ;;  %v191_v27 = vmul.f32 %v406_v25, %v184_v17 }
 0x11f   :  { %v289_v28 = vmul.f32 %v408_v26, %v282_v18 }
 0x120   :  { %v193_v30 = vsel %vm192_vm2, %v184_v17, %v191_v27 }
 0x121   :  { %v196_v32 = vsel %vm194_vm3, %v195_v29, %v193_v30  ;;  %v291_v33 = vsel %vm290_vm4, %v282_v18, %v289_v28 }
 0x122   :  { %v294_v34 = vsel %vm292_vm5, %v293_v31, %v291_v33 }
 0x123   :  { %v296_v36 = vsub.f32 %v196_v32, %v294_v34 }
 0x125   :  { %v298_v37 = vadd.f32 %v297_v35, %v296_v36 }
 0x127   :  { %v299_v38 = vmax.f32 %v298_v37, 0.0 }
 0x129   :  { %v302_v39 = vsel %vm301_vm6, %v299_v38, 0.0 }
 0x12a   :  { %303 = vadd.xlane.f32.xlu0 %v302_v39 }
 0x1b7   :  { %v304_v40 = vpop.xlane.xlu0 %303 }
 0x1b8   :  { %v305_v41 = vrot.slane %v304_v40, 4 }
 0x1ba   :  { %v306_v42 = vadd.f32 %v305_v41, %v304_v40 }
 0x1bc   :  { %v307_v43 = vrot.slane %v306_v42, 2 }
 0x1be   :  { %v308_v44 = vadd.f32 %v307_v43, %v306_v42 }
 0x1c0   :  { %v309_v45 = vrot.slane %v308_v44, 1 }
 0x1c2   :  { %v310_v46 = vadd.f32 %v309_v45, %v308_v44 }
 0x1c4   :  { %397 = vpush %v310_v46 }
 0x1f5   :  { %s398_s16 = spop %397 }
 0x1f6   :  { %v312_v48 = vstv %s398_s16 }
 0x1f7   :  { %v313_v49 = vadd.f32 %v312_v48, %v300_v47 }
 0x1f9   :  { %314 = vst [vmem:[#allocation8] sm:$0x1] %v313_v49 }
 0x1fa   :  { %464 = shalt.err (!%p461_p6)
}
 0x1fb   :  { %s465_s20 = scalar_lea.hbm %s562_s4, 16 }
 0x1fc   :  { %p466_p7 = scmp.ne.s32.totalorder %s562_s4, %s465_s20  ;;  %p469_p8 = scmp.lt.u32.totalorder %s465_s20, %s562_s4 }
 0x1fe   :  { %p471_p9 = pnand %p469_p8, %p466_p7 }
 0x200   :  { %474 = shalt.err (!%p471_p9)
}
 0x201   :  { %324 = dma.vmem_to_hbm [thread:$0]  %s322_s15, 16, %s562_s4, [#allocation5]  }
 0x202   :  { %479 = dma.done.wait [#allocation5], 16  }
 0x203   :  { %480 = vsyncadd [#allocation5], 4294967280 }
 0x204   :  { %328 = vsyncpa [#allocation4], 1 }
 0x205   :  { %329 = vsyncpa [#allocation7], 1 }
 0x206   :  { %330 = vsyncpa [#allocation5], 1 }

</bundles_post_ra>
